<compile_context>
chip_gen: v6e
topology: v6e:2x2x1
jax: 0.10.0
libtpu: 0.0.40
codegen_flags: <defaults>
</compile_context>

<pallas_src>
import functools

import jax
import jax.numpy as jnp
from jax import lax
from jax.experimental import pallas as pl
from jax.experimental.pallas import tpu as pltpu


def _round_up(x, m):
    return ((x + m - 1) // m) * m


def _conv2x2(x, w_ref, b_ref, Hp, Wp):
    """2x2 VALID conv of one padded image via XLU rolls + 4 VPU MACs.

    1-in/1-out channel: there is no useful MXU contraction, so this stays on the VPU.
    Wraparound from the rolls only lands in the padded last row/column, outside the
    valid (H-1, W-1) output window.
    """
    w00 = w_ref[0]
    w01 = w_ref[1]
    w10 = w_ref[2]
    w11 = w_ref[3]
    # Fold the `x - 0.5` pre-subtract into the bias (scalar-unit work only).
    b_eff = b_ref[0] - 0.5 * (w00 + w01 + w10 + w11)

    x_r = pltpu.roll(x, Wp - 1, axis=1)             # x[i, j+1]
    x_d = pltpu.roll(x, Hp - 1, axis=0)             # x[i+1, j]
    x_dr = pltpu.roll(x_d, Wp - 1, axis=1)          # x[i+1, j+1]
    return w00 * x + w01 * x_r + w10 * x_d + w11 * x_dr + b_eff


def count_kernel(w_ref, b_ref, x_ref, cnt_ref, *, Ho, Wo):
    """Serial pass: accumulate the global threshold count.

    w_ref:   SMEM (4,)        flattened 2x2 weight [w00, w01, w10, w11]
    b_ref:   SMEM (1,)        conv bias
    x_ref:   VMEM (1, Hp, Wp) zero-padded input image (lane/sublane dense)
    cnt_ref: SMEM (1,)        global count of (sigmoid(conv) > 0.5), accumulated across the grid
    """
    Hp, Wp = x_ref.shape[1], x_ref.shape[2]
    conv = _conv2x2(x_ref[0], w_ref, b_ref, Hp, Wp)

    # Count over the valid (Ho, Wo) output window, on the pre-activation sign
    # (sigmoid is strictly monotonic with sigmoid(0) = 0.5) -> no EUP work here.
    rows = lax.broadcasted_iota(jnp.int32, (Hp, Wp), 0)
    cols = lax.broadcasted_iota(jnp.int32, (Hp, Wp), 1)
    valid = (rows < Ho) & (cols < Wo)
    tile_cnt = jnp.sum(jnp.where(valid & (conv > 0.0), 1.0, 0.0))

    @pl.when(pl.program_id(0) == 0)
    def _():
        cnt_ref[0] = 0.0

    cnt_ref[0] += tile_cnt
    # TODO(synk): the `get_current_context().is_tracing` assertion is an NNCF
    # framework-tracing check with no Pallas equivalent; it is dropped.


def conv_scale_kernel(w_ref, b_ref, cnt_ref, x_ref, y_ref, out_ref):
    """Parallel pass: y = sigmoid(conv2x2(x - 0.5)); out = y * cnt.

    cnt_ref: SMEM (1,)        global count computed by pass 1
    x_ref:   VMEM (1, Hp, Wp) padded input image
    y_ref:   VMEM (1, Hp, Wp) sigmoid(conv); padded region is ignored (sliced off wrapper-side)
    out_ref: VMEM (1, Hp, Wp) y * cnt
    """
    Hp, Wp = x_ref.shape[1], x_ref.shape[2]
    conv = _conv2x2(x_ref[0], w_ref, b_ref, Hp, Wp)
    y = jax.nn.sigmoid(conv)
    y_ref[0] = y
    out_ref[0] = y * cnt_ref[0]


def simple_model_forward(x_nchw, weight, bias):
    """x_nchw: (N, 1, H, W) float32. Returns (y, out), each (N, 1, H-1, W-1)."""
    assert x_nchw.shape[1] == 1, "module is defined with in_channels=1"
    x = jnp.squeeze(x_nchw, axis=1).astype(jnp.float32)        # (N, H, W)
    N, H, W = x.shape
    Ho, Wo = H - 1, W - 1

    # Lane/sublane-dense padded spatial dims (last dim mult of 128, 2nd-last mult of 8).
    Hp = _round_up(max(H, 8), 8)
    Wp = _round_up(max(W, 128), 128)
    if (Hp, Wp) != (H, W):
        x_p = jnp.pad(x, ((0, 0), (0, Hp - H), (0, Wp - W)))
    else:
        x_p = x

    w_flat = weight.reshape(-1).astype(jnp.float32)            # (4,)
    b_flat = bias.reshape(-1).astype(jnp.float32)              # (1,)

    # Pass 1: global count (whole-tensor reduction -> grid axis must be "arbitrary").
    # Deliberately light: no sigmoid, no vector output.
    cnt = pl.pallas_call(
        functools.partial(count_kernel, Ho=Ho, Wo=Wo),
        out_shape=jax.ShapeDtypeStruct((1,), jnp.float32),
        grid=(N,),
        in_specs=[
            pl.BlockSpec(memory_space=pltpu.SMEM),             # conv weight scalars
            pl.BlockSpec(memory_space=pltpu.SMEM),             # conv bias scalar
            pl.BlockSpec((1, Hp, Wp), lambda n: (n, 0, 0)),    # one image per step
        ],
        out_specs=pl.BlockSpec(memory_space=pltpu.SMEM),       # resident count accumulator
        compiler_params=pltpu.CompilerParams(
            dimension_semantics=("arbitrary",)),
    )(w_flat, b_flat, x_p)

    # Pass 2: y = sigmoid(conv), out = y * cnt. Independent per image -> "parallel"
    # (shards across both TensorCores on v7x); lane-dense blocks, double-buffered.
    y_p, out_p = pl.pallas_call(
        conv_scale_kernel,
        out_shape=(
            jax.ShapeDtypeStruct((N, Hp, Wp), jnp.float32),
            jax.ShapeDtypeStruct((N, Hp, Wp), jnp.float32),
        ),
        grid=(N,),
        in_specs=[
            pl.BlockSpec(memory_space=pltpu.SMEM),             # conv weight scalars
            pl.BlockSpec(memory_space=pltpu.SMEM),             # conv bias scalar
            pl.BlockSpec(memory_space=pltpu.SMEM),             # global count
            pl.BlockSpec((1, Hp, Wp), lambda n: (n, 0, 0)),    # one image per step
        ],
        out_specs=(
            pl.BlockSpec((1, Hp, Wp), lambda n: (n, 0, 0)),    # y
            pl.BlockSpec((1, Hp, Wp), lambda n: (n, 0, 0)),    # out
        ),
        compiler_params=pltpu.CompilerParams(
            dimension_semantics=("parallel",)),
    )(w_flat, b_flat, cnt, x_p)

    # Slice back to the valid conv-output window and restore the NCHW channel dim.
    y = y_p[:, :Ho, :Wo][:, None, :, :]
    out = out_p[:, :Ho, :Wo][:, None, :, :]
    return y, out


if __name__ == "__main__":
    # Deterministic parameters matching NNCF's create_conv(1, 1, 2):
    # weight = fill(1.0) + eye(2) -> [[2, 1], [1, 2]], bias = 0.
    weight = (jnp.ones((1, 1, 2, 2), jnp.float32)
              + jnp.eye(2, dtype=jnp.float32)[None, None, :, :])
    bias = jnp.zeros((1,), jnp.float32)

    key = jax.random.PRNGKey(0)
    x = jax.random.uniform(key, (2, 1, 16, 16), dtype=jnp.float32)

    y, out = simple_model_forward(x, weight, bias)
    jax.block_until_ready((y, out))

    # Pure-JAX reference (slicing-based conv; count via the mathematically
    # identical pre-activation criterion).
    xm = jnp.squeeze(x, axis=1) - 0.5
    w = weight[0, 0]
    conv_ref = (w[0, 0] * xm[:, :-1, :-1] + w[0, 1] * xm[:, :-1, 1:]
                + w[1, 0] * xm[:, 1:, :-1] + w[1, 1] * xm[:, 1:, 1:]) + bias[0]
    y_expect = jax.nn.sigmoid(conv_ref)[:, None, :, :]
    cnt_expect = jnp.sum((conv_ref > 0.0).astype(jnp.float32))
    out_expect = y_expect * cnt_expect

    assert y.shape == (2, 1, 15, 15) and out.shape == (2, 1, 15, 15)
    assert y.dtype == jnp.float32 and out.dtype == jnp.float32
    assert jnp.allclose(y, y_expect, atol=1e-5, rtol=1e-5)
    assert jnp.allclose(out, out_expect, atol=1e-3, rtol=1e-5)
    print("KERNEL_OK")
</pallas_src>

<mosaic_0001>
module attributes {stable_mosaic.version = 11 : i64} {
  func.func @count_kernel(%arg0: i32, %arg1: memref<4xf32, #tpu.memory_space<smem>>, %arg2: memref<1xf32, #tpu.memory_space<smem>>, %arg3: memref<1x16x128xf32, #tpu.memory_space<vmem>>, %arg4: memref<1xf32, #tpu.memory_space<smem>>) attributes {dimension_semantics = [#tpu.dimension_semantics<arbitrary>], iteration_bounds = array<i64: 2>, scalar_prefetch = 0 : i64, scratch_operands = 0 : i64, tpu.core_type = #tpu.core_type<tc>, window_params = [{transform_indices = @transform_0, window_bounds = array<i64: 4>}, {transform_indices = @transform_1, window_bounds = array<i64: 1>}, {transform_indices = @transform_2, window_bounds = array<i64: 1, 16, 128>}, {transform_indices = @transform_3, window_bounds = array<i64: 1>}]} {
    %c0 = arith.constant 0 : index
    %c0_0 = arith.constant 0 : index
    %c0_1 = arith.constant 0 : index
    %0 = vector.load %arg3[%c0, %c0_0, %c0_1] : memref<1x16x128xf32, #tpu.memory_space<vmem>>, vector<1x16x128xf32>
    %1 = vector.shape_cast %0 : vector<1x16x128xf32> to vector<16x128xf32>
    %c0_2 = arith.constant 0 : index
    %2 = memref.load %arg1[%c0_2] : memref<4xf32, #tpu.memory_space<smem>>
    %c1 = arith.constant 1 : index
    %3 = memref.load %arg1[%c1] : memref<4xf32, #tpu.memory_space<smem>>
    %c2 = arith.constant 2 : index
    %4 = memref.load %arg1[%c2] : memref<4xf32, #tpu.memory_space<smem>>
    %c3 = arith.constant 3 : index
    %5 = memref.load %arg1[%c3] : memref<4xf32, #tpu.memory_space<smem>>
    %c0_3 = arith.constant 0 : index
    %6 = memref.load %arg2[%c0_3] : memref<1xf32, #tpu.memory_space<smem>>
    %7 = arith.addf %2, %3 : f32
    %8 = arith.addf %7, %4 : f32
    %9 = arith.addf %8, %5 : f32
    %cst = arith.constant 5.000000e-01 : f32
    %10 = arith.mulf %cst, %9 : f32
    %11 = arith.subf %6, %10 : f32
    %c127_i32 = arith.constant 127 : i32
    %12 = tpu.dynamic_rotate %1 by %c127_i32 dim 1 : vector<16x128xf32>, i32 -> vector<16x128xf32>
    %c15_i32 = arith.constant 15 : i32
    %13 = tpu.dynamic_rotate %1 by %c15_i32 dim 0 : vector<16x128xf32>, i32 -> vector<16x128xf32>
    %c127_i32_4 = arith.constant 127 : i32
    %14 = tpu.dynamic_rotate %13 by %c127_i32_4 dim 1 : vector<16x128xf32>, i32 -> vector<16x128xf32>
    %15 = vector.broadcast %2 : f32 to vector<16x128xf32>
    %16 = arith.mulf %15, %1 : vector<16x128xf32>
    %17 = vector.broadcast %3 : f32 to vector<16x128xf32>
    %18 = arith.mulf %17, %12 : vector<16x128xf32>
    %19 = arith.addf %16, %18 : vector<16x128xf32>
    %20 = vector.broadcast %4 : f32 to vector<16x128xf32>
    %21 = arith.mulf %20, %13 : vector<16x128xf32>
    %22 = arith.addf %19, %21 : vector<16x128xf32>
    %23 = vector.broadcast %5 : f32 to vector<16x128xf32>
    %24 = arith.mulf %23, %14 : vector<16x128xf32>
    %25 = arith.addf %22, %24 : vector<16x128xf32>
    %26 = vector.broadcast %11 : f32 to vector<16x128xf32>
    %27 = arith.addf %25, %26 : vector<16x128xf32>
    %28 = tpu.iota {dimensions = array<i32: 0>} : vector<16x128xi32>
    %29 = tpu.iota {dimensions = array<i32: 1>} : vector<16x128xi32>
    %c15_i32_5 = arith.constant 15 : i32
    %30 = vector.broadcast %c15_i32_5 : i32 to vector<16x128xi32>
    %31 = arith.cmpi slt, %28, %30 : vector<16x128xi32>
    %c15_i32_6 = arith.constant 15 : i32
    %32 = vector.broadcast %c15_i32_6 : i32 to vector<16x128xi32>
    %33 = arith.cmpi slt, %29, %32 : vector<16x128xi32>
    %34 = arith.andi %31, %33 : vector<16x128xi1>
    %cst_7 = arith.constant 0.000000e+00 : f32
    %35 = vector.broadcast %cst_7 : f32 to vector<16x128xf32>
    %36 = arith.cmpf ogt, %27, %35 : vector<16x128xf32>
    %37 = arith.andi %34, %36 : vector<16x128xi1>
    %cst_8 = arith.constant 1.000000e+00 : f32
    %cst_9 = arith.constant 0.000000e+00 : f32
    %38 = vector.broadcast %cst_8 : f32 to vector<16x128xf32>
    %39 = vector.broadcast %cst_9 : f32 to vector<16x128xf32>
    %40 = arith.select %37, %38, %39 : vector<16x128xi1>, vector<16x128xf32>
    %41 = vector.shape_cast %40 : vector<16x128xf32> to vector<1x16x128xf32>
    %cst_10 = arith.constant dense<0.000000e+00> : vector<1xf32>
    %42 = vector.multi_reduction <add>, %41, %cst_10 [1, 2] : vector<1x16x128xf32> to vector<1xf32>
    %43 = vector.shape_cast %42 : vector<1xf32> to vector<1x1x1xf32>
    %44 = vector.extract %43[0, 0, 0] : f32 from vector<1x1x1xf32>
    %c0_i32 = arith.constant 0 : i32
    %45 = arith.cmpi eq, %arg0, %c0_i32 : i32
    %46 = arith.extui %45 : i1 to i32
    %c0_i32_11 = arith.constant 0 : i32
    %47 = arith.cmpi ne, %46, %c0_i32_11 : i32
    scf.if %47 {
      %cst_14 = arith.constant 0.000000e+00 : f32
      %c0_15 = arith.constant 0 : index
      %51 = memref.load %arg4[%c0_15] : memref<1xf32, #tpu.memory_space<smem>>
      memref.store %cst_14, %arg4[%c0_15] : memref<1xf32, #tpu.memory_space<smem>>
    } else {
    }
    %c0_12 = arith.constant 0 : index
    %48 = memref.load %arg4[%c0_12] : memref<1xf32, #tpu.memory_space<smem>>
    %49 = arith.addf %48, %44 : f32
    %c0_13 = arith.constant 0 : index
    %50 = memref.load %arg4[%c0_13] : memref<1xf32, #tpu.memory_space<smem>>
    memref.store %49, %arg4[%c0_13] : memref<1xf32, #tpu.memory_space<smem>>
    return
  }
  func.func @transform_0(%arg0: i32) -> i32 {
    %c0_i32 = arith.constant 0 : i32
    %c0_i32_0 = arith.constant 0 : i32
    return %c0_i32 : i32
  }
  func.func @transform_1(%arg0: i32) -> i32 {
    %c0_i32 = arith.constant 0 : i32
    %c0_i32_0 = arith.constant 0 : i32
    return %c0_i32 : i32
  }
  func.func @transform_2(%arg0: i32) -> (i32, i32, i32) {
    %c0_i32 = arith.constant 0 : i32
    %c0_i32_0 = arith.constant 0 : i32
    %c0_i32_1 = arith.constant 0 : i32
    return %arg0, %c0_i32, %c0_i32_0 : i32, i32, i32
  }
  func.func @transform_3(%arg0: i32) -> i32 {
    %c0_i32 = arith.constant 0 : i32
    %c0_i32_0 = arith.constant 0 : i32
    return %c0_i32 : i32
  }
}

</mosaic_0001>

<bundles_post_ra>
// kernel: tpu_custom_call.1
= control target key start
LH: loop header
LB: loop body
LE: loop exit
PB: predicated region body
PF: predicated region fallthrough
CT: control target
= control target key end

     0   :  { %s695_s0 = inlined_call_operand.vmem [shape: f32[4], index: 0, kind: input, shape index: {}]   ;;  %s696_s1 = inlined_call_operand.<no memory space> [shape: f32[1], index: 1, kind: input, shape index: {}]   ;;  %s697_s2 = inlined_call_operand.hbm [shape: f32[2,16,128], index: 2, kind: input, shape index: {}]   ;;  %s698_s3 = inlined_call_operand.hbm [shape: f32[1], index: 3, kind: output, shape index: {}]  }
   0x1   :  { %8 = sst [smem:[#allocation2]] %s696_s1 }
   0x2   :  { %9 = vsyncpa [#allocation6], 0 }
   0x3   :  { %10 = vsyncpa [#allocation4], 0 }
   0x4   :  { %12 = vsyncpa [#allocation4 + $0x1], 0 }
   0x5   :  { %13 = vsyncpa [#allocation5], 0  ;;  %s556_s14 = smov 0   ;;  %s558_s15 = smov 0  }
   0x6   :  { %s560_s16 = smov 0   ;;  %s562_s17 = smov 0  }
   0x7 LB: > { %s342_s1 = sadd.s32 4294967295, %s523_s17   ;;  %s576_s18 = sadd.s32 1, %s523_s17   ;;  %s523_s17 = sphi %s562_s17, %s716_s17   ;;  %s519_s16 = sphi %s560_s16, %s715_s16   ;;  %s515_s15 = sphi %s558_s15, %s714_s15   ;;  %s511_s14 = sphi %s556_s14, %s713_s14  }
   0x8   : > { %s65_s19 = ssub.s32 %s523_s17, %s576_s18  ;;  %s68_s20 = sadd.s32 1, %s519_s16 }
   0x9   : > { %p66_p0 = scmp.eq.s32.totalorder %s65_s19, 0  ;;  %p75_p1 = scmp.ne.s32.totalorder %s519_s16, %s515_s15 }
   0xa   : > { %p76_p2 = scmp.eq.s32.totalorder %s523_s17, 0  ;;  %p81_p3 = scmp.ne.s32.totalorder %s515_s15, %s511_s14 }
   0xb   : > { %s586_s21 = scalar_select %p66_p0, %s519_s16, %s68_s20  }
   0xc   : > { %p77_p4 = por %p76_p2, %p75_p1  ;;  %p590_p5 = scmp.eq.s32.totalorder %s342_s1, 0 }
   0xd   : > { %p343_p6 = scmp.ge.s32.totalorder %s523_s17, 1  ;;  %p113_p7 = scmp.lt.s32.totalorder %s523_s17, 3 }
   0xe   : > { %s703_s22 = scalar_select %p590_p5, 1, 0 }
   0xf   : > { %p598_p8 = por %p590_p5, %p81_p3  ;;  %p602_p9 = pnand %p343_p6, %p113_p7 }
  0x10   : > { %s126_s27 = sshll.u32 %s695_s0, 4  ;;  %p384_p11 = scmp.lt.s32.totalorder %s523_s17, 2  ;;  %s127_s27 = int_to_ptr.vmem [resolvable:$true] %s126_s27 }
  0x11   : > { %s704_s23 = scalar_select %p598_p8, 1, 0 }
  0x12   : > { %s705_s24 = scalar_select %p602_p9, 1, 0 }
  0x13   : > { %p375_p10 = pneg %p602_p9  ;;  %s140_s28 = sand.u32 1, %s519_s16  }
  0x14   : > { %p619_p13 = pnand %p384_p11, %p77_p4  ;;  %s346_s4 = sshll.u32 %s140_s28, 4 }
  0x15   : > { %p615_p12 = pnand %p375_p10, %p590_p5  ;;  %s428_s5 = scalar_lea.vmem %s127_s27, 16 }
  0x16   : > { %p429_p0 = scmp.ne.s32.totalorder %s127_s27, %s428_s5  ;;  %p436_p6 = scmp.lt.s32.totalorder %s127_s27, %s127_s27 }
  0x17   : > { %p430_p1 = pneg %p615_p12  ;;  %p437_p7 = scmp.lt.s32.totalorder %s428_s5, %s428_s5 }
  0x19   : > { %p431_p2 = pnand %p430_p1, %p429_p0  ;;  %p438_p8 = por %p437_p7, %p436_p6 }
  0x1b   : > { %p432_p3 = pneg %p431_p2 }
  0x1d   : > { %p439_p9 = pnand %p438_p8, %p432_p3 }
  0x1f   : > { %442 = shalt.err (!%p439_p9)
}
  0x20   : > { %s525_s6 = smov [#allocation3]   ;;  %s360_s7 = sshll.u32 %s523_s17, 8 }
  0x21   : > { %378 = dma.vmem_to_smem (!%p615_p12), %s127_s27, 16, %s525_s6, [#allocation6]  }
  0x22   : > { %s631_s10 = scalar_lea.hbm %s697_s2, %s360_s7  ;;  %s144_s11 = scalar_lea.vmem [#allocation7], %s346_s4 }
  0x23   : > { %s151_s12 = sshll.u32 %s144_s11, 4  ;;  %s635_s13 = scalar_lea.sflag [#allocation4], %s140_s28  ;;  %s633_s12 = int_to_ptr.vmem [resolvable:$true] %s151_s12 }
  0x24   : > { %s443_s14 = scalar_lea.hbm %s631_s10, 256  ;;  %p445_p8 = pneg %p619_p13 }
  0x25   : > { %p444_p4 = scmp.ne.s32.totalorder %s631_s10, %s443_s14  ;;  %s448_s25 = scalar_lea.hbm %s697_s2, 512 }
  0x26   : > { %p449_p11 = scmp.lt.s32.totalorder %s631_s10, %s697_s2  ;;  %p450_p12 = scmp.lt.s32.totalorder %s448_s25, %s443_s14 }
  0x27   : > { %p446_p9 = pnand %p445_p8, %p444_p4 }
  0x28   : > { %p451_p0 = por %p450_p12, %p449_p11 }
  0x29   : > { %p447_p10 = pneg %p446_p9 }
  0x2b   : > { %p452_p1 = pnand %p451_p0, %p447_p10 }
  0x2d   : > { %455 = shalt.err (!%p452_p1)
}
  0x2e   : > { %s456_s28 = scalar_lea.vmem %s633_s12, 256  ;;  %s526_s29 = smov [#allocation7]  }
  0x2f   : > { %p457_p2 = scmp.ne.s32.totalorder %s633_s12, %s456_s28  ;;  %s461_s4 = sshll.u32 %s526_s29, 4  ;;  %s462_s4 = int_to_ptr.vmem [resolvable:$false] %s461_s4 }
  0x30   : > { %s463_s5 = scalar_lea.vmem %s462_s4, 512  ;;  %p464_p7 = scmp.lt.s32.totalorder %s633_s12, %s462_s4 }
  0x31   : > { %p459_p3 = pnand %p457_p2, %p445_p8  ;;  %p465_p4 = scmp.lt.s32.totalorder %s463_s5, %s456_s28 }
  0x33   : > { %p460_p6 = pneg %p459_p3  ;;  %p466_p9 = por %p465_p4, %p464_p7 }
  0x35   : > { %p467_p5 = pnand %p466_p9, %p460_p6 }
  0x37   : > { %470 = shalt.err (!%p467_p5)
}
  0x38   : > { %s527_s6 = smov 128   ;;  %s528_s7 = smov 8  }
  0x39   : > { %382 = dma.hbm_to_vmem [thread:$0]  (!%p619_p13), %s631_s10, 256, %s633_s12, %s635_s13, %s527_s6, %s527_s6, %s528_s7  }
  0x3a   : > { %p708_p8 = scmp.ne.s32.totalorder %s705_s24, 0 }
  0x3b   : > { %p709_p10 = scmp.ne.s32.totalorder (!%p708_p8), %s703_s22, 0 }
  0x3c   : > { %163 = sbr.rel (%p708_p8) target bundleno = 415 (0x19f), region = 32 }
  0x41   : > { %498 = dma.done.wait (%p709_p10), [#allocation6], 16  }
  0x42   : > { %500 = vsyncadd (%p709_p10), [#allocation6], 4294967280  ;;  %s169_s8 = sand.u32 1, %s515_s15   ;;  %p710_p5 = scmp.ne.s32.totalorder %s704_s23, 0 }
  0x43   : > { %s351_s9 = sshll.u32 %s169_s8, 4  ;;  %s170_s11 = scalar_lea.sflag [#allocation4], %s169_s8 }
  0x44   : > { %s173_s14 = scalar_lea.vmem [#allocation7], %s351_s9 }
  0x45   : > { %502 = dma.done.wait (%p710_p5), %s170_s11, 256  }
  0x46   : > { %504 = vsyncadd (%p710_p5), %s170_s11, 4294967040 }
  0x47   : > { %178 = sfence }
  0x48   : > { %v192_v0 = vld [vmem:[%s173_s14] sm:$0xff]  ;;  %v193_v1 = vld [vmem:[%s173_s14 + $0x8] sm:$0xff]  ;;  %v210_v2 = vlaneseq  ;;  %s529_s24 = smov 127   ;;  %s194_s23 = sld [smem:[#allocation3]]  ;;  %v530_v36 = vmov 0.0  }
  0x49   : > { %204 = vrot.lane.b32.xlu0 %v192_v0, %s529_s24  ;;  %v208_v3 = vrot.slane %v192_v0, 1  ;;  %v209_v4 = vrot.slane %v193_v1, 1  ;;  %s352_s30 = sld [smem:[#allocation3 + $0x1]]  ;;  %s531_s28 = smov 0.0  }
  0x4a   : > { %v211_v5 = vshrl.u32 %v210_v2, 7  ;;  %v242_v6 = vand.u32 127, %v210_v2  ;;  %s353_s10 = sld [smem:[#allocation3 + $0x2]]  ;;  %p387_p13 = scmp.eq.s32.totalorder %s342_s1, 1 }
  0x4b   : > { %s354_s12 = sld [smem:[#allocation3 + $0x3]]  ;;  %s532_s6 = smov [#allocation8]  }
  0x4c   : > { %vm212_vm0 = vcmp.lt.s32.totalorder %v211_v5, 7  ;;  %v240_v7 = vadd.s32 8, %v211_v5  ;;  %vm245_vm2 = vcmp.lt.s32.totalorder %v242_v6, 15  ;;  %s198_s20 = sld [smem:[#allocation2]] }
  0x4d   : > { %206 = vrot.lane.b32.xlu0 %v193_v1, %s529_s24  ;;  %v213_v8 = vsel %vm212_vm0, %v208_v3, %v209_v4  ;;  %v214_v9 = vsel %vm212_vm0, %v209_v4, %v208_v3  ;;  %370 = sst [smem:[#allocation8]] (%p709_p10), %s531_s28 }
  0x4e   : > { %215 = vrot.lane.b32.xlu1 %v213_v8, %s529_s24  ;;  %vm244_vm1 = vcmp.lt.s32.totalorder %v240_v7, 15  ;;  %v219_v11 = vstv %s194_s23  ;;  %s270_s29 = sld [smem:[#allocation8]] }
  0x4f   : > { %vm668_vm3 = vmand %vm244_vm1, %vm245_vm2  ;;  %s199_s13 = sadd.f32 %s352_s30, %s194_s23  ;;  %v222_v13 = vstv %s352_s30  ;;  %v220_v14 = vmul.f32 %v219_v11, %v192_v0  ;;  %v221_v18 = vmul.f32 %v219_v11, %v193_v1 }
  0x50   : > { %v227_v12 = vstv %s353_s10 }
  0x51   : > { %s200_s19 = sadd.f32 %s353_s10, %s199_s13  ;;  %v228_v16 = vmul.f32 %v227_v12, %v213_v8  ;;  %v232_v20 = vstv %s354_s12  ;;  %v229_v22 = vmul.f32 %v227_v12, %v214_v9 }
  0x52   : > { %217 = vrot.lane.b32.xlu1 %v214_v9, %s529_s24 }
  0x53   : > { %s201_s25 = sadd.f32 %s354_s12, %s200_s19 }
  0x55   : > { %s202_s26 = smul.f32 0.5, %s201_s25 }
  0x57   : > { %s203_s27 = ssub.f32 %s198_s20, %s202_s26 }
  0x59   : > { %v237_v28 = vstv %s203_s27 }
  0xbb   : > { %v205_v15 = vpop.permute.xlu0 %204 }
  0xbc   : > { %v223_v17 = vmul.f32 %v222_v13, %v205_v15 }
  0xbe   : > { %v225_v19 = vadd.f32 %v223_v17, %v220_v14 }
  0xbf   : > { %v207_v21 = vpop.permute.xlu0 %206 }
  0xc0   : > { %v224_v23 = vmul.f32 %v222_v13, %v207_v21  ;;  %v216_v24 = vpop.permute.xlu1 %215  ;;  %v230_v25 = vadd.f32 %v228_v16, %v225_v19 }
  0xc1   : > { %v233_v26 = vmul.f32 %v232_v20, %v216_v24 }
  0xc2   : > { %v226_v27 = vadd.f32 %v224_v23, %v221_v18 }
  0xc3   : > { %v235_v29 = vadd.f32 %v233_v26, %v230_v25 }
  0xc4   : > { %v231_v30 = vadd.f32 %v229_v22, %v226_v27  ;;  %v218_v31 = vpop.permute.xlu1 %217 }
  0xc5   : > { %v238_v32 = vadd.f32 %v237_v28, %v235_v29  ;;  %v234_v33 = vmul.f32 %v232_v20, %v218_v31 }
  0xc7   : > { %v236_v34 = vadd.f32 %v234_v33, %v231_v30  ;;  %vm248_vm4 = vcmp.gt.f32.partialorder %v238_v32, 0.0 }
  0xc8   : > { %vm250_vm5 = vmand %vm245_vm2, %vm248_vm4 }
  0xc9   : > { %v239_v35 = vadd.f32 %v237_v28, %v236_v34  ;;  %v252_v37 = vsel %vm250_vm5, 1.0, %v530_v36 }
  0xcb   : > { %vm249_vm6 = vcmp.gt.f32.partialorder %v239_v35, 0.0 }
  0xcc   : > { %vm251_vm7 = vmand %vm668_vm3, %vm249_vm6 }
  0xcd   : > { %v253_v38 = vsel %vm251_vm7, 1.0, %v530_v36 }
  0xce   : > { %v254_v39 = vadd.f32 %v253_v38, %v252_v37 }
  0xd0   : > { %255 = vadd.xlane.f32.xlu0 %v254_v39 }
 0x159   : > { %v256_v40 = vpop.xlane.xlu0 %255 }
 0x15a   : > { %v257_v41 = vrot.slane %v256_v40, 4 }
 0x15c   : > { %v258_v42 = vadd.f32 %v257_v41, %v256_v40 }
 0x15e   : > { %v259_v43 = vrot.slane %v258_v42, 2 }
 0x160   : > { %v260_v44 = vadd.f32 %v259_v43, %v258_v42 }
 0x162   : > { %v261_v45 = vrot.slane %v260_v44, 1 }
 0x164   : > { %v262_v46 = vadd.f32 %v261_v45, %v260_v44 }
 0x166   : > { %361 = vpush %v262_v46 }
 0x197   : > { %s362_s4 = spop %361 }
 0x198   : > { %s271_s5 = sadd.f32 %s362_s4, %s270_s29 }
 0x19a   : > { %273 = sst [smem:[#allocation8]] %s271_s5 }
 0x19b   : > { %372 = dma.smem_to_hbm (%p387_p13), %s532_s6, 16, %s698_s3, [#allocation5]  }
 0x19c   : > { %506 = dma.done.wait (%p387_p13), [#allocation5], 16  }
 0x19d   : > { %508 = vsyncadd (%p387_p13), [#allocation5], 4294967280 }
 0x19e   : > { %287 = sfence }
 0x19f PF: > { %p16_p11 = scmp.ge.s32.totalorder %s576_s18, 4   ;;  %s713_s14 = smov %s515_s15 }
 0x1a0   : > { %s714_s15 = smov %s519_s16  ;;  %s715_s16 = smov %s586_s21 }
 0x1a1   : > { %s716_s17 = smov %s576_s18  ;;  %18 = sbr.rel (!%p16_p11) target bundleno = 7 (0x7), region = 80 }
 0x1a6   :  { %293 = vsyncpa [#allocation4], 1 }
 0x1a7   :  { %295 = vsyncpa [#allocation4 + $0x1], 1 }
 0x1a8   :  { %296 = vsyncpa [#allocation5], 1 }
 0x1a9   :  { %298 = vsyncpa [#allocation5 + $0x1], 1 }
 0x1aa   :  { %299 = vsyncpa [#allocation6], 1 }
 0x1ab   :  { %301 = vsyncpa [#allocation6 + $0x1], 1 }

</bundles_post_ra>
